<compile_context>
chip_gen: v6e
topology: v6e:2x2x1
jax: 0.10.0
libtpu: 0.0.40
codegen_flags: <defaults>
</compile_context>

<pallas_src>
import functools

import jax
import jax.numpy as jnp
from jax.experimental import pallas as pl
from jax.experimental.pallas import tpu as pltpu


def _round_up(x: int, m: int) -> int:
    return (x + m - 1) // m * m


def _choose_tile(dim: int, target: int, align: int):
    """Pick (tile, padded_extent) for one matmul dimension.

    Prefers a tile that exactly divides the align-rounded extent (no padding
    beyond alignment); falls back to `target`-sized tiles otherwise.
    """
    padded = _round_up(dim, align)
    if padded <= target:
        return padded, padded
    best = align
    t = align
    while t <= target:
        if padded % t == 0:
            best = t
        t += align
    if best * 2 >= target:          # found a divisor tile of decent size
        return best, padded
    return target, _round_up(dim, target)


def _pad2d(x, rows: int, cols: int):
    r, c = x.shape
    if (r, c) == (rows, cols):
        return x
    return jnp.pad(x, ((0, rows - r), (0, cols - c)))


# ---------------------------------------------------------------------------
# Kernel: tiled (x @ w_t + bias) with f32 accumulation.
# ---------------------------------------------------------------------------
def _linear_bias_kernel(x_ref, w_ref, b_ref, o_ref, acc_ref):
    # grid = (M tiles, N tiles, K tiles); K (reduction) is the innermost axis.
    k = pl.program_id(2)

    @pl.when(k == 0)
    def _():
        acc_ref[...] = jnp.zeros_like(acc_ref)

    acc_ref[...] += jnp.dot(
        x_ref[...], w_ref[...], preferred_element_type=jnp.float32
    )

    @pl.when(k == pl.num_programs(2) - 1)
    def _():
        # Bias added once per output tile (epilogue), not per K step.
        o_ref[...] = (
            acc_ref[...] + b_ref[...].astype(jnp.float32)
        ).astype(o_ref.dtype)


@functools.partial(jax.jit, static_argnames=("tm", "tn", "tk"))
def _pallas_linear(x2d, w_t, b2d, *, tm, tn, tk):
    """Tiled, pipelined (x2d @ w_t + bias). All shapes pre-aligned to tiles.

    x2d : (M, K)  activations, K (= emb_dim) on the lane axis
    w_t : (K, N)  pre-transposed weight (projection dim lane-dense)
    b2d : (1, N)
    returns (M, N) in x2d.dtype
    """
    M, K = x2d.shape
    Kw, N = w_t.shape
    assert K == Kw, "emb_dim mismatch between activations and weight"
    assert M % tm == 0 and N % tn == 0 and K % tk == 0

    grid = (M // tm, N // tn, K // tk)

    itemsize = jnp.dtype(x2d.dtype).itemsize
    cost = pl.CostEstimate(
        flops=2 * M * N * K,
        transcendentals=0,
        bytes_accessed=(M * K + K * N + N + M * N) * itemsize,
    )

    return pl.pallas_call(
        _linear_bias_kernel,
        out_shape=jax.ShapeDtypeStruct((M, N), x2d.dtype),
        grid_spec=pltpu.PrefetchScalarGridSpec(
            num_scalar_prefetch=0,
            grid=grid,
            in_specs=[
                # activations stream over (M, K)
                pl.BlockSpec((tm, tk), lambda i, j, k: (i, k)),
                # weight tile depends only on (N, K) — independent of M index
                pl.BlockSpec((tk, tn), lambda i, j, k: (k, j)),
                # bias tile depends only on the N index
                pl.BlockSpec((1, tn), lambda i, j, k: (0, j)),
            ],
            out_specs=pl.BlockSpec((tm, tn), lambda i, j, k: (i, j)),
            scratch_shapes=[pltpu.VMEM((tm, tn), jnp.float32)],
        ),
        compiler_params=pltpu.CompilerParams(
            dimension_semantics=("parallel", "parallel", "arbitrary"),
        ),
        cost_estimate=cost,
    )(x2d, w_t, b2d)


# ---------------------------------------------------------------------------
# One linear projection with pre-padded, pre-transposed parameters.
# ---------------------------------------------------------------------------
class _Projection:
    def __init__(self, w, b, *, tn_target=512, tk_target=512):
        # w arrives in PyTorch nn.Linear layout (out_features, in_features).
        out_f, in_f = w.shape
        self.in_features = in_f
        self.out_features = out_f
        self.tk, self.k_pad = _choose_tile(in_f, tk_target, 128)
        self.tn, self.n_pad = _choose_tile(out_f, tn_target, 128)
        # Transposed + lane/sublane padded once here: no per-call layout work.
        self.w_t = _pad2d(jnp.asarray(w.T), self.k_pad, self.n_pad)
        self.b2d = _pad2d(jnp.asarray(b).reshape(1, -1), 1, self.n_pad)

    def apply(self, x, *, tm_target=256):
        lead = x.shape[:-1]
        x2d = x.reshape(-1, self.in_features).astype(self.w_t.dtype)
        m = x2d.shape[0]
        tm, m_pad = _choose_tile(m, tm_target, 8)
        x2d = _pad2d(x2d, m_pad, self.k_pad)
        out = _pallas_linear(x2d, self.w_t, self.b2d,
                             tm=tm, tn=self.tn, tk=self.tk)
        out = out[:m, :self.out_features]
        return out.reshape(*lead, self.out_features)


# ---------------------------------------------------------------------------
# JAX/Pallas port of fms.modules.attention.UnfusedQKV
# ---------------------------------------------------------------------------
class UnfusedQKVPallas:
    def __init__(self, emb_dim, nheads, kvheads, emb_kq_per_head,
                 emb_v_per_head, use_bias, key, param_dtype=jnp.float32):
        self.emb_dim = emb_dim
        self.nheads = nheads
        self.kvheads = kvheads
        self.emb_kq_per_head = emb_kq_per_head
        self.emb_v_per_head = emb_v_per_head
        self.use_bias = use_bias

        kq, kk, kv = jax.random.split(key, 3)

        def trunc_normal(k, shape, std=0.02):
            # matches nn.init.trunc_normal_(mean=0, std=0.02, a=-2, b=2)
            return (jax.random.truncated_normal(
                k, -2.0 / std, 2.0 / std, shape, jnp.float32) * std)

        q_out = nheads * emb_kq_per_head
        k_out = kvheads * emb_kq_per_head
        v_out = kvheads * emb_v_per_head
        self.q_out, self.k_out, self.v_out = q_out, k_out, v_out

        # PyTorch nn.Linear layout (out_features, in_features) — kept for
        # reference comparison / state-dict compatibility.
        self.w_query = trunc_normal(kq, (q_out, emb_dim)).astype(param_dtype)
        self.w_key = trunc_normal(kk, (k_out, emb_dim)).astype(param_dtype)
        self.w_value = trunc_normal(kv, (v_out, emb_dim)).astype(param_dtype)
        # reset_parameters zeroes the biases.
        # TODO(synk): when use_bias=False a bias-free epilogue variant would
        # save one VPU add per tile; zero bias is numerically identical.
        self.b_query = jnp.zeros((q_out,), param_dtype)
        self.b_key = jnp.zeros((k_out,), param_dtype)
        self.b_value = jnp.zeros((v_out,), param_dtype)

        # Per-projection padded params (cross-attention / distinct-input path).
        self.query_proj = _Projection(self.w_query, self.b_query)
        self.key_proj = _Projection(self.w_key, self.b_key)
        self.value_proj = _Projection(self.w_value, self.b_value)

        # Fused QKV params for the self-attention (k = v = q) path: one HBM
        # read of the activations, one kernel launch, wide lane-dense output.
        w_qkv = jnp.concatenate([self.w_query, self.w_key, self.w_value],
                                axis=0)
        b_qkv = jnp.concatenate([self.b_query, self.b_key, self.b_value])
        self.qkv_proj = _Projection(w_qkv, b_qkv)

    def __call__(self, q, k=None, v=None):
        if k is None and v is None:
            k = q
            v = q
        elif k is None or v is None:
            raise ValueError(
                "both k and v must either be given as tensors or both None")

        if (k is q) and (v is q):
            # Fused path: single pallas_call over the concatenated projection.
            fused = self.qkv_proj.apply(q)
            q_end = self.q_out
            k_end = self.q_out + self.k_out
            return (fused[..., :q_end],
                    fused[..., q_end:k_end],
                    fused[..., k_end:])

        # Cross-attention / distinct inputs: three tiled calls.
        queries = self.query_proj.apply(q)
        keys = self.key_proj.apply(k)
        values = self.value_proj.apply(v)
        return queries, keys, values


if __name__ == "__main__":
    # Small, deterministic example shapes.
    batch, seq = 2, 8
    emb_dim = 32
    nheads, kvheads = 4, 2
    emb_kq_per_head, emb_v_per_head = 8, 8

    root = jax.random.PRNGKey(0)
    k_params, k_input, k_input2 = jax.random.split(root, 3)

    module = UnfusedQKVPallas(
        emb_dim, nheads, kvheads, emb_kq_per_head, emb_v_per_head,
        use_bias=True, key=k_params)
    # In production pass param_dtype=jnp.bfloat16 for the MXU fast path
    # (f32 accumulation is already enforced inside the kernel).

    x = jax.random.normal(k_input, (batch, seq, emb_dim), jnp.float32)

    # Fused self-attention path (k = v = q).
    queries, keys, values = module(x, None, None)
    jax.block_until_ready((queries, keys, values))

    ref_q = x @ module.w_query.T + module.b_query
    ref_k = x @ module.w_key.T + module.b_key
    ref_v = x @ module.w_value.T + module.b_value
    assert queries.shape == (batch, seq, nheads * emb_kq_per_head)
    assert keys.shape == (batch, seq, kvheads * emb_kq_per_head)
    assert values.shape == (batch, seq, kvheads * emb_v_per_head)
    assert jnp.allclose(queries, ref_q, atol=1e-5)
    assert jnp.allclose(keys, ref_k, atol=1e-5)
    assert jnp.allclose(values, ref_v, atol=1e-5)

    # Cross-attention path (distinct k/v inputs) exercises the unfused calls.
    x_kv = jax.random.normal(k_input2, (batch, seq, emb_dim), jnp.float32)
    q2, k2, v2 = module(x, x_kv, x_kv)
    jax.block_until_ready((q2, k2, v2))
    assert jnp.allclose(q2, ref_q, atol=1e-5)
    assert jnp.allclose(k2, x_kv @ module.w_key.T + module.b_key, atol=1e-5)
    assert jnp.allclose(v2, x_kv @ module.w_value.T + module.b_value, atol=1e-5)

    print("KERNEL_OK")
</pallas_src>

<mosaic_0001>
module attributes {stable_mosaic.version = 11 : i64} {
  func.func @_linear_bias_kernel(%arg0: i32, %arg1: i32, %arg2: i32, %arg3: memref<16x128xf32, #tpu.memory_space<vmem>>, %arg4: memref<128x128xf32, #tpu.memory_space<vmem>>, %arg5: memref<1x128xf32, #tpu.memory_space<vmem>>, %arg6: memref<16x128xf32, #tpu.memory_space<vmem>>, %arg7: memref<16x128xf32, #tpu.memory_space<vmem>>) attributes {dimension_semantics = [#tpu.dimension_semantics<parallel>, #tpu.dimension_semantics<parallel>, #tpu.dimension_semantics<arbitrary>], iteration_bounds = array<i64: 1, 1, 1>, scalar_prefetch = 0 : i64, scratch_operands = 1 : i64, tpu.core_type = #tpu.core_type<tc>, window_params = [{transform_indices = @transform_0, window_bounds = array<i64: 16, 128>}, {transform_indices = @transform_1, window_bounds = array<i64: 128, 128>}, {transform_indices = @transform_2, window_bounds = array<i64: 1, 128>}, {transform_indices = @transform_3, window_bounds = array<i64: 16, 128>}]} {
    %c0_i32 = arith.constant 0 : i32
    %0 = arith.cmpi eq, %arg2, %c0_i32 : i32
    %1 = arith.extui %0 : i1 to i32
    %c0_i32_0 = arith.constant 0 : i32
    %2 = arith.cmpi ne, %1, %c0_i32_0 : i32
    scf.if %2 {
      %cst_10 = arith.constant 0.000000e+00 : f32
      %12 = vector.broadcast %cst_10 : f32 to vector<16x128xf32>
      %c0_11 = arith.constant 0 : index
      %c0_12 = arith.constant 0 : index
      %13 = vector.load %arg7[%c0_11, %c0_12] : memref<16x128xf32, #tpu.memory_space<vmem>>, vector<16x128xf32>
      tpu.vector_store %arg7[%c0_11, %c0_12], %12 {strides = array<i32>} : memref<16x128xf32, #tpu.memory_space<vmem>>, vector<16x128xf32>,
    } else {
    }
    %c0 = arith.constant 0 : index
    %c0_1 = arith.constant 0 : index
    %3 = vector.load %arg7[%c0, %c0_1] : memref<16x128xf32, #tpu.memory_space<vmem>>, vector<16x128xf32>
    %c0_2 = arith.constant 0 : index
    %c0_3 = arith.constant 0 : index
    %4 = vector.load %arg3[%c0_2, %c0_3] : memref<16x128xf32, #tpu.memory_space<vmem>>, vector<16x128xf32>
    %c0_4 = arith.constant 0 : index
    %c0_5 = arith.constant 0 : index
    %5 = vector.load %arg4[%c0_4, %c0_5] : memref<128x128xf32, #tpu.memory_space<vmem>>, vector<128x128xf32>
    %cst = arith.constant dense<0.000000e+00> : vector<16x128xf32>
    %6 = tpu.matmul %4, %5, %cst {dimension_numbers = #tpu.dot_dimension_numbers<[1], [0], [0], [1], [0, 0, 1, 1], [], []>} : vector<16x128xf32>, vector<128x128xf32>, vector<16x128xf32> -> vector<16x128xf32>
    %7 = arith.addf %3, %6 : vector<16x128xf32>
    %c0_6 = arith.constant 0 : index
    %c0_7 = arith.constant 0 : index
    %8 = vector.load %arg7[%c0_6, %c0_7] : memref<16x128xf32, #tpu.memory_space<vmem>>, vector<16x128xf32>
    tpu.vector_store %arg7[%c0_6, %c0_7], %7 {strides = array<i32>} : memref<16x128xf32, #tpu.memory_space<vmem>>, vector<16x128xf32>,
    %c0_i32_8 = arith.constant 0 : i32
    %9 = arith.cmpi eq, %arg2, %c0_i32_8 : i32
    %10 = arith.extui %9 : i1 to i32
    %c0_i32_9 = arith.constant 0 : i32
    %11 = arith.cmpi ne, %10, %c0_i32_9 : i32
    scf.if %11 {
      %c0_10 = arith.constant 0 : index
      %c0_11 = arith.constant 0 : index
      %12 = vector.load %arg7[%c0_10, %c0_11] : memref<16x128xf32, #tpu.memory_space<vmem>>, vector<16x128xf32>
      %c0_12 = arith.constant 0 : index
      %c0_13 = arith.constant 0 : index
      %13 = vector.load %arg5[%c0_12, %c0_13] : memref<1x128xf32, #tpu.memory_space<vmem>>, vector<1x128xf32>
      %14 = vector.broadcast %13 : vector<1x128xf32> to vector<16x128xf32>
      %15 = arith.addf %12, %14 : vector<16x128xf32>
      %c0_14 = arith.constant 0 : index
      %c0_15 = arith.constant 0 : index
      %16 = vector.load %arg6[%c0_14, %c0_15] : memref<16x128xf32, #tpu.memory_space<vmem>>, vector<16x128xf32>
      tpu.vector_store %arg6[%c0_14, %c0_15], %15 {strides = array<i32>} : memref<16x128xf32, #tpu.memory_space<vmem>>, vector<16x128xf32>,
    } else {
    }
    return
  }
  func.func @transform_0(%arg0: i32, %arg1: i32, %arg2: i32) -> (i32, i32) {
    %c0_i32 = arith.constant 0 : i32
    return %arg0, %arg2 : i32, i32
  }
  func.func @transform_1(%arg0: i32, %arg1: i32, %arg2: i32) -> (i32, i32) {
    %c0_i32 = arith.constant 0 : i32
    return %arg2, %arg1 : i32, i32
  }
  func.func @transform_2(%arg0: i32, %arg1: i32, %arg2: i32) -> (i32, i32) {
    %c0_i32 = arith.constant 0 : i32
    %c0_i32_0 = arith.constant 0 : i32
    return %c0_i32, %arg1 : i32, i32
  }
  func.func @transform_3(%arg0: i32, %arg1: i32, %arg2: i32) -> (i32, i32) {
    %c0_i32 = arith.constant 0 : i32
    return %arg0, %arg1 : i32, i32
  }
}

</mosaic_0001>

<bundles_post_ra>
// kernel: _pallas_linear.1
= control target key start
LH: loop header
LB: loop body
LE: loop exit
PB: predicated region body
PF: predicated region fallthrough
CT: control target
= control target key end

     0   :  { %8 = vsyncpa [#allocation4], 0  ;;  %s353_s0 = inlined_call_operand.hbm [shape: f32[16,128], index: 0, kind: input, shape index: {}]   ;;  %s354_s1 = inlined_call_operand.hbm [shape: f32[128,128], index: 1, kind: input, shape index: {}]   ;;  %s355_s2 = inlined_call_operand.vmem [shape: f32[1,128], index: 2, kind: input, shape index: {}]   ;;  %s356_s3 = inlined_call_operand.hbm [shape: f32[16,128], index: 3, kind: output, shape index: {}]  }
   0x1   :  { %9 = vsyncpa [#allocation7], 0 }
   0x2   :  { %10 = vsyncpa [#allocation5], 0  ;;  %s307_s12 = smov [#allocation3]  }
   0x3   :  { %s16_s13 = sshll.u32 %s307_s12, 4  ;;  %s17_s13 = int_to_ptr.vmem [resolvable:$true] %s16_s13 }
   0x4   :  { %s249_s14 = scalar_lea.vmem %s17_s13, 256  ;;  %p254_p1 = scmp.lt.s32.totalorder %s17_s13, %s17_s13 }
   0x5   :  { %p250_p0 = scmp.ne.s32.totalorder %s17_s13, %s249_s14  ;;  %p255_p2 = scmp.lt.s32.totalorder %s249_s14, %s249_s14 }
   0x7   :  { %p256_p3 = por %p255_p2, %p254_p1 }
   0x9   :  { %p257_p4 = pnand %p256_p3, %p250_p0 }
   0xb   :  { %260 = shalt.err (!%p257_p4)
}
   0xc   :  { %s308_s15 = smov 128   ;;  %s309_s16 = smov 8  }
   0xd   :  { %22 = dma.hbm_to_vmem [thread:$0]  %s353_s0, 256, %s17_s13, [#allocation4], %s308_s15, %s308_s15, %s309_s16  }
   0xe   :  { %s310_s19 = smov [#allocation6]  }
   0xf   :  { %s28_s20 = sshll.u32 %s310_s19, 4  ;;  %s29_s20 = int_to_ptr.vmem [resolvable:$true] %s28_s20 }
  0x10   :  { %s269_s21 = scalar_lea.vmem %s29_s20, 2048  ;;  %p274_p6 = scmp.lt.s32.totalorder %s29_s20, %s29_s20 }
  0x11   :  { %p270_p5 = scmp.ne.s32.totalorder %s29_s20, %s269_s21  ;;  %p275_p7 = scmp.lt.s32.totalorder %s269_s21, %s269_s21 }
  0x13   :  { %p276_p8 = por %p275_p7, %p274_p6 }
  0x15   :  { %p277_p9 = pnand %p276_p8, %p270_p5 }
  0x17   :  { %280 = shalt.err (!%p277_p9)
}
  0x18   :  { %34 = dma.hbm_to_vmem [thread:$0]  %s354_s1, 2048, %s29_s20, [#allocation7], %s308_s15, %s308_s15, %s309_s16  }
  0x19   :  { %301 = dma.done.wait [#allocation4], 256  }
  0x1a   :  { %302 = vsyncadd [#allocation4], 4294967040 }
  0x1b   :  { %303 = dma.done.wait [#allocation7], 2048  }
  0x1c   :  { %304 = vsyncadd [#allocation7], 4294965248  ;;  %v68_v0 = vld [vmem:[#allocation6 + $0x78] sm:$0xff]  ;;  %v67_v1 = vld [vmem:[#allocation6 + $0x70] sm:$0xff]  ;;  %s311_s24 = smov [#allocation8]  }
  0x1d   :  { %201 = vmatprep.subr.mxu0 %v68_v0  ;;  %v66_v2 = vld [vmem:[#allocation6 + $0x68] sm:$0xff]  ;;  %v65_v3 = vld [vmem:[#allocation6 + $0x60] sm:$0xff]  ;;  %v51_v4 = vld [vmem:[#allocation3] sm:$0xff]  ;;  %s169_s25 = sshll.u32 %s311_s24, 4  ;;  %s170_s25 = int_to_ptr.vmem [resolvable:$true] %s169_s25 }
  0x1e   :  { %202 = vmatpush3.msra.mxu0 %v68_v0  ;;  %v64_v5 = vld [vmem:[#allocation6 + $0x58] sm:$0xff]  ;;  %233 = vmatprep.mubr.f32.mxu0 %v51_v4  ;;  %v63_v6 = vld [vmem:[#allocation6 + $0x50] sm:$0xff]  ;;  %v62_v7 = vld [vmem:[#allocation6 + $0x48] sm:$0xff]  ;;  %s281_s26 = scalar_lea.vmem %s170_s25, 256  ;;  %p286_p11 = scmp.lt.s32.totalorder %s170_s25, %s170_s25 }
  0x1f   :  { %203 = vmatprep.subr.mxu0 %v67_v1  ;;  %v61_v8 = vld [vmem:[#allocation6 + $0x40] sm:$0xff]  ;;  %v60_v9 = vld [vmem:[#allocation6 + $0x38] sm:$0xff]  ;;  %v59_v10 = vld [vmem:[#allocation6 + $0x30] sm:$0xff]  ;;  %p282_p10 = scmp.ne.s32.totalorder %s170_s25, %s281_s26  ;;  %p287_p12 = scmp.lt.s32.totalorder %s281_s26, %s281_s26 }
  0x20   :  { %204 = vmatpush3.msra.mxu0 %v67_v1  ;;  %v58_v11 = vld [vmem:[#allocation6 + $0x28] sm:$0xff]  ;;  %v57_v12 = vld [vmem:[#allocation6 + $0x20] sm:$0xff]  ;;  %v56_v13 = vld [vmem:[#allocation6 + $0x18] sm:$0xff] }
  0x21   :  { %205 = vmatprep.subr.mxu0 %v66_v2  ;;  %v55_v14 = vld [vmem:[#allocation6 + $0x10] sm:$0xff]  ;;  %v54_v15 = vld [vmem:[#allocation6 + $0x8] sm:$0xff]  ;;  %v53_v16 = vld [vmem:[#allocation6] sm:$0xff]  ;;  %p288_p13 = por %p287_p12, %p286_p11 }
  0x22   :  { %206 = vmatpush3.msra.mxu0 %v66_v2  ;;  %v52_v17 = vld [vmem:[#allocation3 + $0x8] sm:$0xff]  ;;  %v182_v18 = vld [vmem:[%s355_s2] ss:$0 sm:$0xff] }
  0x23   :  { %207 = vmatprep.subr.mxu0 %v65_v3  ;;  %p289_p0 = pnand %p288_p13, %p282_p10 }
  0x24   :  { %208 = vmatpush3.msra.mxu0 %v65_v3 }
  0x25   :  { %209 = vmatprep.subr.mxu0 %v64_v5 }
  0x26   :  { %210 = vmatpush3.msra.mxu0 %v64_v5 }
  0x27   :  { %211 = vmatprep.subr.mxu0 %v63_v6 }
  0x28   :  { %212 = vmatpush3.msra.mxu0 %v63_v6 }
  0x29   :  { %213 = vmatprep.subr.mxu0 %v62_v7 }
  0x2a   :  { %214 = vmatpush3.msra.mxu0 %v62_v7 }
  0x2b   :  { %215 = vmatprep.subr.mxu0 %v61_v8 }
  0x2c   :  { %216 = vmatpush3.msra.mxu0 %v61_v8 }
  0x2d   :  { %217 = vmatprep.subr.mxu0 %v60_v9 }
  0x2e   :  { %218 = vmatpush3.msra.mxu0 %v60_v9 }
  0x2f   :  { %219 = vmatprep.subr.mxu0 %v59_v10 }
  0x30   :  { %220 = vmatpush3.msra.mxu0 %v59_v10 }
  0x31   :  { %221 = vmatprep.subr.mxu0 %v58_v11 }
  0x32   :  { %222 = vmatpush3.msra.mxu0 %v58_v11 }
  0x33   :  { %223 = vmatprep.subr.mxu0 %v57_v12 }
  0x34   :  { %224 = vmatpush3.msra.mxu0 %v57_v12 }
  0x35   :  { %225 = vmatprep.subr.mxu0 %v56_v13 }
  0x36   :  { %226 = vmatpush3.msra.mxu0 %v56_v13 }
  0x37   :  { %227 = vmatprep.subr.mxu0 %v55_v14 }
  0x38   :  { %228 = vmatpush3.msra.mxu0 %v55_v14 }
  0x39   :  { %229 = vmatprep.subr.mxu0 %v54_v15 }
  0x3a   :  { %230 = vmatpush3.msra.mxu0 %v54_v15 }
  0x3b   :  { %231 = vmatprep.subr.mxu0 %v53_v16 }
  0x3c   :  { %232 = vmatpush3.msra.mxu0 %v53_v16 }
  0x3d   :  { %234 = vmatmul.mubr.f32.vlgmr.msra.gmra.mxu0 %v52_v17 }
  0xfd   :  { %v235_v19 = vpop.f32.mrf.mxu0 }
  0xfe   :  { %v161_v20 = vadd.f32 %v235_v19, %v182_v18 }
  0xff   :  { %v135_v21 = vpop.f32.mrf.mxu0 }
 0x100   :  { %163 = vst [vmem:[#allocation8 + $0x8] sm:$0xff] %v161_v20  ;;  %v160_v22 = vadd.f32 %v182_v18, %v135_v21 }
 0x102   :  { %162 = vst [vmem:[#allocation8] sm:$0xff] %v160_v22 }
 0x103   :  { %292 = shalt.err (!%p289_p0)
}
 0x104   :  { %175 = dma.vmem_to_hbm [thread:$0]  %s170_s25, 256, %s356_s3, [#allocation5], %s308_s15, %s308_s15, %s309_s16  }
 0x105   :  { %305 = dma.done.wait [#allocation5], 256  }
 0x106   :  { %306 = vsyncadd [#allocation5], 4294967040 }
 0x107   :  { %179 = vsyncpa [#allocation4], 1 }
 0x108   :  { %180 = vsyncpa [#allocation7], 1 }
 0x109   :  { %181 = vsyncpa [#allocation5], 1 }

</bundles_post_ra>
